<compile_context>
chip_gen: v7x
topology: tpu7x:2x2x1
jax: 0.10.0
libtpu: 0.0.40
codegen_flags: <defaults>
</compile_context>

<pallas_src>
import jax
import jax.numpy as jnp
import numpy as np
from jax.experimental import pallas as pl
from jax.experimental.pallas import tpu as pltpu


def _round_up(x, m):
    return ((x + m - 1) // m) * m


def _cdiv(a, b):
    return (a + b - 1) // b


# ---------------------------------------------------------------------------
# Kernel bodies
# ---------------------------------------------------------------------------

def _surrogate_block(x_ref, phi_ref, wfc_ref, wfs_ref, wic_ref, wis_ref):
    """One (row-tile, frequency-block) worth of surrogate; returns f32 rows."""
    x = x_ref[...].astype(jnp.float32)

    # Forward half-spectrum real DFT: two MXU launches, no lane concat/slice.
    xr = jnp.dot(x, wfc_ref[...], preferred_element_type=jnp.float32)
    xs = jnp.dot(x, wfs_ref[...], preferred_element_type=jnp.float32)  # -Im
    amp = jnp.sqrt(xr * xr + xs * xs)

    # Re-phase with random Hermitian-symmetric phases (EUP/VPU: free filler
    # under the MXU; do NOT hoist cos/sin to the host).
    phi = phi_ref[...].astype(jnp.float32)
    yr = amp * jnp.cos(phi)
    yi = amp * jnp.sin(phi)

    # Inverse real DFT; fold weights and 1/t baked into wi_cos / wi_sin.
    out = jnp.dot(yr, wic_ref[...], preferred_element_type=jnp.float32)
    out = out + jnp.dot(yi, wis_ref[...], preferred_element_type=jnp.float32)
    return out


def _kernel_resident(x_ref, phi_ref, wfc_ref, wfs_ref, wic_ref, wis_ref, o_ref):
    o_ref[...] = _surrogate_block(
        x_ref, phi_ref, wfc_ref, wfs_ref, wic_ref, wis_ref).astype(o_ref.dtype)


def _kernel_ftiled(x_ref, phi_ref, wfc_ref, wfs_ref, wic_ref, wis_ref, o_ref,
                   acc_ref):
    j = pl.program_id(1)

    @pl.when(j == 0)
    def _():
        acc_ref[...] = jnp.zeros_like(acc_ref)

    acc_ref[...] += _surrogate_block(
        x_ref, phi_ref, wfc_ref, wfs_ref, wic_ref, wis_ref)

    @pl.when(j == pl.num_programs(1) - 1)
    def _():
        o_ref[...] = acc_ref[...].astype(o_ref.dtype)


# ---------------------------------------------------------------------------
# Host-side weight / phase construction
# ---------------------------------------------------------------------------

def _dft_weight_matrices(t, t_pad, f, f_pad):
    """Half-spectrum DFT matrices, zero-padded to multiples of 128.

    wf_cos/wf_sin : (t_pad, f_pad) forward matrices.
    wi_cos/wi_sin : (f_pad, t_pad) inverse matrices with the Hermitian fold
    weights (DC and even-t Nyquist count once, all other bins twice) and the
    1/t normalisation folded in.  out = yr @ wi_cos + yi @ wi_sin.
    """
    n = np.arange(t)
    k = np.arange(f)
    arg = 2.0 * np.pi * np.outer(n, k) / t                      # (t, f)

    wf_cos = np.zeros((t_pad, f_pad), dtype=np.float32)
    wf_sin = np.zeros((t_pad, f_pad), dtype=np.float32)
    wf_cos[:t, :f] = np.cos(arg)
    wf_sin[:t, :f] = np.sin(arg)

    w = np.full((f,), 2.0 / t, dtype=np.float64)
    w[0] = 1.0 / t
    if t % 2 == 0:
        w[-1] = 1.0 / t                                         # Nyquist bin

    arg_i = arg.T                                               # (f, t)
    wi_cos = np.zeros((f_pad, t_pad), dtype=np.float32)
    wi_sin = np.zeros((f_pad, t_pad), dtype=np.float32)
    wi_cos[:f, :t] = w[:, None] * np.cos(arg_i)
    wi_sin[:f, :t] = -(w[:, None] * np.sin(arg_i))
    return (jnp.asarray(wf_cos), jnp.asarray(wf_sin),
            jnp.asarray(wi_cos), jnp.asarray(wi_sin))


def _random_half_phases(key, batch, channels, t):
    """Random phases for the non-redundant half spectrum (f = t//2 + 1 bins).

    DC (and Nyquist for even t) are 0; the negative-frequency half is implied
    by Hermitian symmetry — same construction as the PyTorch module.
    """
    f = t // 2 + 1
    n_rand = (t - 1) // 2
    rand = jax.random.uniform(key, (batch, channels, n_rand),
                              dtype=jnp.float32) * 2.0 * jnp.pi
    return jnp.pad(rand, ((0, 0), (0, 0), (1, f - 1 - n_rand)))


def _full_hermitian_phases(key, batch, channels, t):
    """Full-spectrum phases exactly as the PyTorch module builds them (same
    uniform draw as _random_half_phases).  Used only for the FFT reference."""
    n_rand = (t - 1) // 2
    rand = jax.random.uniform(key, (batch, channels, n_rand),
                              dtype=jnp.float32) * 2.0 * jnp.pi
    phases = jnp.zeros((batch, channels, t), dtype=jnp.float32)
    phases = phases.at[..., 1:1 + n_rand].set(rand)
    phases = phases.at[..., t - n_rand:].set(-jnp.flip(rand, axis=-1))
    return phases


# ---------------------------------------------------------------------------
# Planning (VMEM-capacity aware)
# ---------------------------------------------------------------------------

def _vmem_limit_bytes():
    try:
        cap = int(pltpu.get_tpu_info().vmem_capacity_bytes)
    except Exception:
        cap = 64 * 1024 * 1024              # conservative (v7x per-core)
    return max(32 * 1024 * 1024, cap - 16 * 1024 * 1024)


def _choose_row_tile(m, cap):
    """>= 2 grid steps when possible (v7x megacore) and < 8 rows pad waste."""
    n_tiles = max(2 if m >= 16 else 1, _cdiv(m, cap))
    tm = _round_up(_cdiv(m, n_tiles), 8)
    return tm, n_tiles


def _plan(t_pad, f_pad, vmem_limit, force_frequency_tiled, max_f_tile):
    budget = int(vmem_limit * 0.80)
    weight_bytes = 4 * 4 * t_pad * f_pad                     # 4 resident f32 mats

    def resident_bytes(tm):
        streams = 2 * 4 * tm * (2 * t_pad + f_pad)           # x/out/phi, dbl-buf
        temps = 8 * 4 * tm * f_pad                           # xr/xs/amp/yr/yi...
        return weight_bytes + streams + temps

    if not force_frequency_tiled:
        for tm_cap in (512, 256, 128):
            if resident_bytes(tm_cap) <= budget:
                return "resident", tm_cap, None

    # Frequency-tiled fallback: stream the weight matrices in f blocks.
    tm_cap = 128
    tf = 128
    for cand in (512, 256, 128):
        if max_f_tile is not None and cand > max_f_tile:
            continue
        if f_pad % cand != 0:
            continue
        wblk = 2 * 4 * 4 * t_pad * cand                      # 4 mats, dbl-buf
        rows = (2 * 4 * tm_cap * (2 * t_pad + cand)          # x/out/phi streams
                + 4 * tm_cap * t_pad                         # f32 accumulator
                + 8 * 4 * tm_cap * cand)                     # temps
        if wblk + rows <= budget:
            tf = cand
            break
    return "ftiled", tm_cap, tf


# ---------------------------------------------------------------------------
# Public wrapper
# ---------------------------------------------------------------------------

def ft_surrogate_eeg(eeg, key, *, force_frequency_tiled=False, max_f_tile=None):
    """eeg: (batch, channels, time) -> FT surrogate, same shape & dtype."""
    batch, channels, t = eeg.shape
    dtype = eeg.dtype
    m = batch * channels

    f = t // 2 + 1
    t_pad = _round_up(t, 128)
    f_pad = _round_up(f, 128)

    phases = _random_half_phases(key, batch, channels, t)
    wf_cos, wf_sin, wi_cos, wi_sin = _dft_weight_matrices(t, t_pad, f, f_pad)

    vmem_limit = _vmem_limit_bytes()
    mode, tm_cap, tf = _plan(t_pad, f_pad, vmem_limit,
                             force_frequency_tiled, max_f_tile)
    tm, n_row_tiles = _choose_row_tile(m, tm_cap)
    m_pad = tm * n_row_tiles

    # Single fused pad (no zeros+set slab).  Padded time/freq columns are
    # harmless because the corresponding weight rows/columns are zero.
    x2d = jnp.pad(eeg.reshape(m, t), ((0, m_pad - m), (0, t_pad - t)))
    phi2d = jnp.pad(phases.reshape(m, f), ((0, m_pad - m), (0, f_pad - f)))

    if mode == "resident":
        grid = (n_row_tiles,)
        in_specs = [
            # Pipelined row streams (double-buffered by the runtime).
            pl.BlockSpec((tm, t_pad), lambda i: (i, 0)),
            pl.BlockSpec((tm, f_pad), lambda i: (i, 0)),
            # Constant DFT matrices: fully resident in VMEM, single copy.
            pl.BlockSpec(memory_space=pltpu.MemorySpace.VMEM),
            pl.BlockSpec(memory_space=pltpu.MemorySpace.VMEM),
            pl.BlockSpec(memory_space=pltpu.MemorySpace.VMEM),
            pl.BlockSpec(memory_space=pltpu.MemorySpace.VMEM),
        ]
        out_spec = pl.BlockSpec((tm, t_pad), lambda i: (i, 0))
        kernel = _kernel_resident
        scratch = []
        dim_sem = ("parallel",)
    else:
        n_f_tiles = f_pad // tf
        grid = (n_row_tiles, n_f_tiles)
        in_specs = [
            pl.BlockSpec((tm, t_pad), lambda i, j: (i, 0)),
            pl.BlockSpec((tm, tf), lambda i, j: (i, j)),
            # Weight matrices streamed per frequency block.
            pl.BlockSpec((t_pad, tf), lambda i, j: (0, j)),
            pl.BlockSpec((t_pad, tf), lambda i, j: (0, j)),
            pl.BlockSpec((tf, t_pad), lambda i, j: (j, 0)),
            pl.BlockSpec((tf, t_pad), lambda i, j: (j, 0)),
        ]
        out_spec = pl.BlockSpec((tm, t_pad), lambda i, j: (i, 0))
        kernel = _kernel_ftiled
        scratch = [pltpu.VMEM((tm, t_pad), jnp.float32)]
        dim_sem = ("parallel", "arbitrary")

    out2d = pl.pallas_call(
        kernel,
        out_shape=jax.ShapeDtypeStruct((m_pad, t_pad), dtype),
        grid_spec=pltpu.PrefetchScalarGridSpec(
            num_scalar_prefetch=0,
            grid=grid,
            in_specs=in_specs,
            out_specs=out_spec,
            scratch_shapes=scratch,
        ),
        compiler_params=pltpu.CompilerParams(
            dimension_semantics=dim_sem,
            vmem_limit_bytes=vmem_limit,
        ),
    )(x2d, phi2d, wf_cos, wf_sin, wi_cos, wi_sin)

    return out2d[:m, :t].reshape(batch, channels, t)


# ---------------------------------------------------------------------------
# Self-test
# ---------------------------------------------------------------------------

def _reference(eeg, key):
    """Pure-JAX FFT reference using the same random phases (PyTorch spec)."""
    batch, channels, t = eeg.shape
    phases = _full_hermitian_phases(key, batch, channels, t)
    amp = jnp.abs(jnp.fft.fft(eeg.astype(jnp.float32), axis=-1))
    ref = jnp.real(jnp.fft.ifft(amp * jnp.exp(1j * phases), axis=-1))
    return ref.astype(eeg.dtype)


if __name__ == "__main__":
    key = jax.random.PRNGKey(0)
    k_data, k_phase = jax.random.split(key)

    # Even and odd t through the default (weight-resident) plan.
    for (batch, channels, t) in [(2, 4, 16), (2, 4, 15)]:
        eeg = jax.random.normal(k_data, (batch, channels, t), dtype=jnp.float32)
        got = jax.block_until_ready(ft_surrogate_eeg(eeg, k_phase))
        ref = _reference(eeg, k_phase)
        np.testing.assert_allclose(np.asarray(got), np.asarray(ref),
                                   rtol=1e-4, atol=1e-4)

    # Exercise the frequency-tiled (weight-streaming) plan used for long
    # recordings / small-VMEM chips: t=256 -> two 128-wide frequency tiles.
    batch, channels, t = 2, 4, 256
    eeg = jax.random.normal(k_data, (batch, channels, t), dtype=jnp.float32)
    got_res = jax.block_until_ready(ft_surrogate_eeg(eeg, k_phase))
    got_ft = jax.block_until_ready(
        ft_surrogate_eeg(eeg, k_phase, force_frequency_tiled=True,
                         max_f_tile=128))
    ref = _reference(eeg, k_phase)
    np.testing.assert_allclose(np.asarray(got_ft), np.asarray(got_res),
                               rtol=1e-5, atol=1e-5)
    np.testing.assert_allclose(np.asarray(got_res), np.asarray(ref),
                               rtol=2e-4, atol=2e-4)

    print("KERNEL_OK")
</pallas_src>

<mosaic_0001>
module attributes {stable_mosaic.version = 11 : i64} {
  func.func @_kernel_resident(%arg0: i32, %arg1: memref<8x128xf32, #tpu.memory_space<vmem>>, %arg2: memref<8x128xf32, #tpu.memory_space<vmem>>, %arg3: memref<128x128xf32, #tpu.memory_space<vmem>>, %arg4: memref<128x128xf32, #tpu.memory_space<vmem>>, %arg5: memref<128x128xf32, #tpu.memory_space<vmem>>, %arg6: memref<128x128xf32, #tpu.memory_space<vmem>>, %arg7: memref<8x128xf32, #tpu.memory_space<vmem>>) attributes {dimension_semantics = [#tpu.dimension_semantics<parallel>], iteration_bounds = array<i64: 1>, scalar_prefetch = 0 : i64, scratch_operands = 0 : i64, tpu.core_type = #tpu.core_type<tc>, window_params = [{transform_indices = @transform_0, window_bounds = array<i64: 8, 128>}, {transform_indices = @transform_1, window_bounds = array<i64: 8, 128>}, {pipeline_mode = #tpu.pipeline_mode<synchronous>, transform_indices = @transform_2, window_bounds = array<i64: 128, 128>}, {pipeline_mode = #tpu.pipeline_mode<synchronous>, transform_indices = @transform_3, window_bounds = array<i64: 128, 128>}, {pipeline_mode = #tpu.pipeline_mode<synchronous>, transform_indices = @transform_4, window_bounds = array<i64: 128, 128>}, {pipeline_mode = #tpu.pipeline_mode<synchronous>, transform_indices = @transform_5, window_bounds = array<i64: 128, 128>}, {transform_indices = @transform_6, window_bounds = array<i64: 8, 128>}]} {
    %c0 = arith.constant 0 : index
    %c0_0 = arith.constant 0 : index
    %0 = vector.load %arg1[%c0, %c0_0] : memref<8x128xf32, #tpu.memory_space<vmem>>, vector<8x128xf32>
    %c0_1 = arith.constant 0 : index
    %c0_2 = arith.constant 0 : index
    %1 = vector.load %arg3[%c0_1, %c0_2] : memref<128x128xf32, #tpu.memory_space<vmem>>, vector<128x128xf32>
    %cst = arith.constant dense<0.000000e+00> : vector<8x128xf32>
    %2 = tpu.matmul %0, %1, %cst {dimension_numbers = #tpu.dot_dimension_numbers<[1], [0], [0], [1], [0, 0, 1, 1], [], []>} : vector<8x128xf32>, vector<128x128xf32>, vector<8x128xf32> -> vector<8x128xf32>
    %c0_3 = arith.constant 0 : index
    %c0_4 = arith.constant 0 : index
    %3 = vector.load %arg4[%c0_3, %c0_4] : memref<128x128xf32, #tpu.memory_space<vmem>>, vector<128x128xf32>
    %cst_5 = arith.constant dense<0.000000e+00> : vector<8x128xf32>
    %4 = tpu.matmul %0, %3, %cst_5 {dimension_numbers = #tpu.dot_dimension_numbers<[1], [0], [0], [1], [0, 0, 1, 1], [], []>} : vector<8x128xf32>, vector<128x128xf32>, vector<8x128xf32> -> vector<8x128xf32>
    %5 = arith.mulf %2, %2 : vector<8x128xf32>
    %6 = arith.mulf %4, %4 : vector<8x128xf32>
    %7 = arith.addf %5, %6 : vector<8x128xf32>
    %8 = math.sqrt %7 : vector<8x128xf32>
    %c0_6 = arith.constant 0 : index
    %c0_7 = arith.constant 0 : index
    %9 = vector.load %arg2[%c0_6, %c0_7] : memref<8x128xf32, #tpu.memory_space<vmem>>, vector<8x128xf32>
    %10 = math.cos %9 : vector<8x128xf32>
    %11 = arith.mulf %8, %10 : vector<8x128xf32>
    %12 = math.sin %9 : vector<8x128xf32>
    %13 = arith.mulf %8, %12 : vector<8x128xf32>
    %c0_8 = arith.constant 0 : index
    %c0_9 = arith.constant 0 : index
    %14 = vector.load %arg5[%c0_8, %c0_9] : memref<128x128xf32, #tpu.memory_space<vmem>>, vector<128x128xf32>
    %cst_10 = arith.constant dense<0.000000e+00> : vector<8x128xf32>
    %15 = tpu.matmul %11, %14, %cst_10 {dimension_numbers = #tpu.dot_dimension_numbers<[1], [0], [0], [1], [0, 0, 1, 1], [], []>} : vector<8x128xf32>, vector<128x128xf32>, vector<8x128xf32> -> vector<8x128xf32>
    %c0_11 = arith.constant 0 : index
    %c0_12 = arith.constant 0 : index
    %16 = vector.load %arg6[%c0_11, %c0_12] : memref<128x128xf32, #tpu.memory_space<vmem>>, vector<128x128xf32>
    %cst_13 = arith.constant dense<0.000000e+00> : vector<8x128xf32>
    %17 = tpu.matmul %13, %16, %cst_13 {dimension_numbers = #tpu.dot_dimension_numbers<[1], [0], [0], [1], [0, 0, 1, 1], [], []>} : vector<8x128xf32>, vector<128x128xf32>, vector<8x128xf32> -> vector<8x128xf32>
    %18 = arith.addf %15, %17 : vector<8x128xf32>
    %c0_14 = arith.constant 0 : index
    %c0_15 = arith.constant 0 : index
    %19 = vector.load %arg7[%c0_14, %c0_15] : memref<8x128xf32, #tpu.memory_space<vmem>>, vector<8x128xf32>
    tpu.vector_store %arg7[%c0_14, %c0_15], %18 {strides = array<i32>} : memref<8x128xf32, #tpu.memory_space<vmem>>, vector<8x128xf32>,
    return
  }
  func.func @transform_0(%arg0: i32) -> (i32, i32) {
    %c0_i32 = arith.constant 0 : i32
    %c0_i32_0 = arith.constant 0 : i32
    return %arg0, %c0_i32 : i32, i32
  }
  func.func @transform_1(%arg0: i32) -> (i32, i32) {
    %c0_i32 = arith.constant 0 : i32
    %c0_i32_0 = arith.constant 0 : i32
    return %arg0, %c0_i32 : i32, i32
  }
  func.func @transform_2(%arg0: i32) -> (i32, i32) {
    %c0_i32 = arith.constant 0 : i32
    %c0_i32_0 = arith.constant 0 : i32
    %c0_i32_1 = arith.constant 0 : i32
    return %c0_i32, %c0_i32_0 : i32, i32
  }
  func.func @transform_3(%arg0: i32) -> (i32, i32) {
    %c0_i32 = arith.constant 0 : i32
    %c0_i32_0 = arith.constant 0 : i32
    %c0_i32_1 = arith.constant 0 : i32
    return %c0_i32, %c0_i32_0 : i32, i32
  }
  func.func @transform_4(%arg0: i32) -> (i32, i32) {
    %c0_i32 = arith.constant 0 : i32
    %c0_i32_0 = arith.constant 0 : i32
    %c0_i32_1 = arith.constant 0 : i32
    return %c0_i32, %c0_i32_0 : i32, i32
  }
  func.func @transform_5(%arg0: i32) -> (i32, i32) {
    %c0_i32 = arith.constant 0 : i32
    %c0_i32_0 = arith.constant 0 : i32
    %c0_i32_1 = arith.constant 0 : i32
    return %c0_i32, %c0_i32_0 : i32, i32
  }
  func.func @transform_6(%arg0: i32) -> (i32, i32) {
    %c0_i32 = arith.constant 0 : i32
    %c0_i32_0 = arith.constant 0 : i32
    return %arg0, %c0_i32 : i32, i32
  }
}

</mosaic_0001>

<bundles_post_ra>
// kernel: tpu_custom_call.1
= control target key start
LH: loop header
LB: loop body
LE: loop exit
PB: predicated region body
PF: predicated region fallthrough
CT: control target
= control target key end

     0   :  { %11 = vsyncpa [#allocation3], 0  ;;  %s1418_s0 = inlined_call_operand.hbm [shape: f32[8,128], index: 0, kind: input, shape index: {}]   ;;  %s1419_s1 = inlined_call_operand.hbm [shape: f32[8,128], index: 1, kind: input, shape index: {}]   ;;  %s1420_s2 = inlined_call_operand.hbm [shape: f32[128,128], index: 2, kind: input, shape index: {}]   ;;  %s1421_s3 = inlined_call_operand.hbm [shape: f32[128,128], index: 3, kind: input, shape index: {}]   ;;  %s1422_s4 = inlined_call_operand.hbm [shape: f32[128,128], index: 4, kind: input, shape index: {}]   ;;  %s1423_s5 = inlined_call_operand.hbm [shape: f32[128,128], index: 5, kind: input, shape index: {}]   ;;  %s1424_s6 = inlined_call_operand.hbm [shape: f32[8,128], index: 6, kind: output, shape index: {}]  }
   0x1   :  { %12 = vsyncpa [#allocation6], 0 }
   0x2   :  { %13 = vsyncpa [#allocation9], 0 }
   0x3   :  { %14 = vsyncpa [#allocation12], 0 }
   0x4   :  { %15 = vsyncpa [#allocation4], 0  ;;  %s1192_s21 = smov [#allocation5]   ;;  %s1028_s25 = scalar_lea.hbm %s1419_s1, 128 }
   0x5   :  { %s32_s22 = sshll.u32 %s1192_s21, 4  ;;  %p1029_p0 = scmp.ne.s32.totalorder %s1419_s1, %s1028_s25  ;;  %s33_s22 = int_to_ptr.vmem [resolvable:$true] %s32_s22 }
   0x6   :  { %p1032_p1 = scmp.lt.u32.totalorder %s1028_s25, %s1419_s1 }
   0x8   :  { %p1034_p2 = pnand %p1032_p1, %p1029_p0 }
   0xa   :  { %1037 = shalt.err (!%p1034_p2)
}
   0xb   :  { %s1038_s30 = scalar_lea.vmem %s33_s22, 128  ;;  %p1043_p4 = scmp.lt.s32.totalorder %s33_s22, %s33_s22 }
   0xc   :  { %p1039_p3 = scmp.ne.s32.totalorder %s33_s22, %s1038_s30  ;;  %p1044_p5 = scmp.lt.s32.totalorder %s1038_s30, %s1038_s30 }
   0xe   :  { %p1045_p6 = por %p1044_p5, %p1043_p4 }
  0x10   :  { %p1046_p7 = pnand %p1045_p6, %p1039_p3 }
  0x12   :  { %1049 = shalt.err (!%p1046_p7)
}
  0x13   :  { %35 = dma.hbm_to_vmem [thread:$0]  %s1419_s1, 128, %s33_s22, [#allocation6]  }
  0x14   :  { %s1193_s9 = smov [#allocation8]   ;;  %s1194_s11 = smov [#allocation2]  }
  0x15   :  { %s53_s10 = sshll.u32 %s1193_s9, 4  ;;  %s22_s12 = sshll.u32 %s1194_s11, 4  ;;  %s54_s10 = int_to_ptr.vmem [resolvable:$true] %s53_s10  ;;  %s23_s12 = int_to_ptr.vmem [resolvable:$true] %s22_s12 }
  0x16   :  { %s1050_s15 = scalar_lea.hbm %s1421_s3, 2048 }
  0x17   :  { %p1051_p8 = scmp.ne.s32.totalorder %s1421_s3, %s1050_s15  ;;  %p1054_p9 = scmp.lt.u32.totalorder %s1050_s15, %s1421_s3 }
  0x19   :  { %p1056_p10 = pnand %p1054_p9, %p1051_p8 }
  0x1b   :  { %1059 = shalt.err (!%p1056_p10)
}
  0x1c   :  { %s1060_s1 = scalar_lea.vmem %s54_s10, 2048  ;;  %p1065_p12 = scmp.lt.s32.totalorder %s54_s10, %s54_s10 }
  0x1d   :  { %p1061_p11 = scmp.ne.s32.totalorder %s54_s10, %s1060_s1  ;;  %p1066_p13 = scmp.lt.s32.totalorder %s1060_s1, %s1060_s1 }
  0x1f   :  { %p1067_p0 = por %p1066_p13, %p1065_p12 }
  0x21   :  { %p1068_p1 = pnand %p1067_p0, %p1061_p11 }
  0x23   :  { %1071 = shalt.err (!%p1068_p1)
}
  0x24   :  { %s1195_s20 = smov 128   ;;  %s1196_s21 = smov 8  }
  0x25   :  { %59 = dma.hbm_to_vmem [thread:$0]  %s1421_s3, 2048, %s54_s10, [#allocation9], %s1195_s20, %s1195_s20, %s1196_s21  }
  0x26   :  { %s1072_s26 = scalar_lea.hbm %s1418_s0, 128 }
  0x27   :  { %p1073_p2 = scmp.ne.s32.totalorder %s1418_s0, %s1072_s26  ;;  %p1076_p3 = scmp.lt.u32.totalorder %s1072_s26, %s1418_s0 }
  0x29   :  { %p1078_p4 = pnand %p1076_p3, %p1073_p2 }
  0x2b   :  { %1081 = shalt.err (!%p1078_p4)
}
  0x2c   :  { %s1082_s7 = scalar_lea.vmem %s23_s12, 128  ;;  %p1087_p6 = scmp.lt.s32.totalorder %s23_s12, %s23_s12 }
  0x2d   :  { %p1083_p5 = scmp.ne.s32.totalorder %s23_s12, %s1082_s7  ;;  %p1088_p7 = scmp.lt.s32.totalorder %s1082_s7, %s1082_s7 }
  0x2f   :  { %p1089_p8 = por %p1088_p7, %p1087_p6 }
  0x31   :  { %p1090_p9 = pnand %p1089_p8, %p1083_p5 }
  0x33   :  { %1093 = shalt.err (!%p1090_p9)
}
  0x34   :  { %25 = dma.hbm_to_vmem [thread:$0]  %s1418_s0, 128, %s23_s12, [#allocation3]  }
  0x35   :  { %s1197_s9 = smov [#allocation7]   ;;  %s1198_s11 = smov [#allocation10]  }
  0x36   :  { %s41_s10 = sshll.u32 %s1197_s9, 4  ;;  %s65_s13 = sshll.u32 %s1198_s11, 4  ;;  %s42_s10 = int_to_ptr.vmem [resolvable:$true] %s41_s10  ;;  %s66_s13 = int_to_ptr.vmem [resolvable:$true] %s65_s13 }
  0x37   :  { %s1094_s16 = scalar_lea.hbm %s1420_s2, 2048 }
  0x38   :  { %p1095_p10 = scmp.ne.s32.totalorder %s1420_s2, %s1094_s16  ;;  %p1098_p11 = scmp.lt.u32.totalorder %s1094_s16, %s1420_s2 }
  0x3a   :  { %p1100_p12 = pnand %p1098_p11, %p1095_p10 }
  0x3c   :  { %1103 = shalt.err (!%p1100_p12)
}
  0x3d   :  { %s1104_s0 = scalar_lea.vmem %s42_s10, 2048  ;;  %p1109_p0 = scmp.lt.s32.totalorder %s42_s10, %s42_s10 }
  0x3e   :  { %p1105_p13 = scmp.ne.s32.totalorder %s42_s10, %s1104_s0  ;;  %p1110_p1 = scmp.lt.s32.totalorder %s1104_s0, %s1104_s0 }
  0x40   :  { %p1111_p2 = por %p1110_p1, %p1109_p0 }
  0x42   :  { %p1112_p3 = pnand %p1111_p2, %p1105_p13 }
  0x44   :  { %1115 = shalt.err (!%p1112_p3)
}
  0x45   :  { %47 = dma.hbm_to_vmem [thread:$0]  %s1420_s2, 2048, %s42_s10, [#allocation6], %s1195_s20, %s1195_s20, %s1196_s21  }
  0x46   :  { %s1116_s25 = scalar_lea.hbm %s1422_s4, 2048 }
  0x47   :  { %p1117_p4 = scmp.ne.s32.totalorder %s1422_s4, %s1116_s25  ;;  %p1120_p5 = scmp.lt.u32.totalorder %s1116_s25, %s1422_s4 }
  0x49   :  { %p1122_p6 = pnand %p1120_p5, %p1117_p4 }
  0x4b   :  { %1125 = shalt.err (!%p1122_p6)
}
  0x4c   :  { %s1126_s30 = scalar_lea.vmem %s66_s13, 2048  ;;  %p1131_p8 = scmp.lt.s32.totalorder %s66_s13, %s66_s13 }
  0x4d   :  { %p1127_p7 = scmp.ne.s32.totalorder %s66_s13, %s1126_s30  ;;  %p1132_p9 = scmp.lt.s32.totalorder %s1126_s30, %s1126_s30 }
  0x4f   :  { %p1133_p10 = por %p1132_p9, %p1131_p8 }
  0x51   :  { %p1134_p11 = pnand %p1133_p10, %p1127_p7 }
  0x53   :  { %1137 = shalt.err (!%p1134_p11)
}
  0x54   :  { %71 = dma.hbm_to_vmem [thread:$0]  %s1422_s4, 2048, %s66_s13, [#allocation9], %s1195_s20, %s1195_s20, %s1196_s21  }
  0x55   :  { %s1199_s3 = smov [#allocation11]   ;;  %s1138_s11 = scalar_lea.hbm %s1423_s5, 2048 }
  0x56   :  { %s77_s8 = sshll.u32 %s1199_s3, 4  ;;  %p1139_p12 = scmp.ne.s32.totalorder %s1423_s5, %s1138_s11  ;;  %s78_s8 = int_to_ptr.vmem [resolvable:$true] %s77_s8 }
  0x57   :  { %p1142_p13 = scmp.lt.u32.totalorder %s1138_s11, %s1423_s5 }
  0x59   :  { %p1144_p0 = pnand %p1142_p13, %p1139_p12 }
  0x5b   :  { %1147 = shalt.err (!%p1144_p0)
}
  0x5c   :  { %s1148_s18 = scalar_lea.vmem %s78_s8, 2048  ;;  %p1153_p2 = scmp.lt.s32.totalorder %s78_s8, %s78_s8 }
  0x5d   :  { %p1149_p1 = scmp.ne.s32.totalorder %s78_s8, %s1148_s18  ;;  %p1154_p3 = scmp.lt.s32.totalorder %s1148_s18, %s1148_s18 }
  0x5f   :  { %p1155_p4 = por %p1154_p3, %p1153_p2 }
  0x61   :  { %p1156_p5 = pnand %p1155_p4, %p1149_p1 }
  0x63   :  { %1159 = shalt.err (!%p1156_p5)
}
  0x64   :  { %83 = dma.hbm_to_vmem [thread:$0]  %s1423_s5, 2048, %s78_s8, [#allocation12], %s1195_s20, %s1195_s20, %s1196_s21  }
  0x65   :  { %1182 = dma.done.wait [#allocation3], 128  }
  0x66   :  { %1183 = vsyncadd [#allocation3], 4294967168 }
  0x67   :  { %1184 = dma.done.wait [#allocation6], 2176  }
  0x68   :  { %1185 = vsyncadd [#allocation6], 4294965120 }
  0x69   :  { %1186 = dma.done.wait [#allocation9], 4096  }
  0x6a   :  { %1187 = vsyncadd [#allocation9], 4294963200 }
  0x6b   :  { %1188 = dma.done.wait [#allocation12], 2048  }
  0x6c   :  { %1189 = vsyncadd [#allocation12], 4294965248  ;;  %v1200_v0 = vmov 0.0|0.0   ;;  %vm1201_vm0 = vmmov 0   ;;  %v1202_v1 = vmov 0.0   ;;  %v103_v2 = vld [vmem:[#allocation7] sm:$0xff] }
  0x6d   :  { %902 = vmatprep.subr.bf16.mxu1 %v1200_v0  ;;  %794 = vmatprep.mubr.msk.f32.mxu1 %vm1201_vm0, %v1202_v1  ;;  %v104_v3 = vld [vmem:[#allocation7 + $0x8] sm:$0xff]  ;;  %v105_v4 = vld [vmem:[#allocation7 + $0x10] sm:$0xff]  ;;  %v106_v6 = vld [vmem:[#allocation7 + $0x18] sm:$0xff]  ;;  %s1209_s5 = smov [#allocation13]  }
  0x6e   :  { %950 = vmatprep.subr.bf16.mxu0 %v1200_v0  ;;  %864 = vmatprep.mubr.msk.f32.mxu0 %vm1201_vm0, %v1202_v1  ;;  %v903_v5 = vpack.c.bf16 %v104_v3, %v103_v2  ;;  %v906_v7 = vpack.c.bf16 %v106_v6, %v105_v4  ;;  %v107_v8 = vld [vmem:[#allocation7 + $0x20] sm:$0xff]  ;;  %v108_v9 = vld [vmem:[#allocation7 + $0x28] sm:$0xff]  ;;  %v109_v11 = vld [vmem:[#allocation7 + $0x30] sm:$0xff]  ;;  %s674_s20 = sshll.u32 %s1209_s5, 4  ;;  %s675_s20 = int_to_ptr.vmem [resolvable:$true] %s674_s20 }
  0x6f   :  { %v909_v10 = vpack.c.bf16 %v108_v9, %v107_v8  ;;  %v110_v12 = vld [vmem:[#allocation7 + $0x38] sm:$0xff]  ;;  %v111_v14 = vld [vmem:[#allocation7 + $0x40] sm:$0xff]  ;;  %v112_v15 = vld [vmem:[#allocation7 + $0x48] sm:$0xff]  ;;  %s1160_s21 = scalar_lea.vmem %s675_s20, 128  ;;  %p1165_p7 = scmp.lt.s32.totalorder %s675_s20, %s675_s20 }
  0x70   :  { %904 = vmatpush3.bf16.msra.mxu1 %v903_v5  ;;  %v912_v13 = vpack.c.bf16 %v110_v12, %v109_v11  ;;  %v915_v16 = vpack.c.bf16 %v112_v15, %v111_v14  ;;  %v113_v17 = vld [vmem:[#allocation7 + $0x50] sm:$0xff]  ;;  %v114_v18 = vld [vmem:[#allocation7 + $0x58] sm:$0xff]  ;;  %v115_v20 = vld [vmem:[#allocation7 + $0x60] sm:$0xff]  ;;  %p1161_p6 = scmp.ne.s32.totalorder %s675_s20, %s1160_s21  ;;  %p1166_p8 = scmp.lt.s32.totalorder %s1160_s21, %s1160_s21 }
  0x71   :  { %905 = vmatprep.subr.bf16.mxu1 %v1200_v0  ;;  %v918_v19 = vpack.c.bf16 %v114_v18, %v113_v17  ;;  %v116_v21 = vld [vmem:[#allocation7 + $0x68] sm:$0xff]  ;;  %v117_v23 = vld [vmem:[#allocation7 + $0x70] sm:$0xff]  ;;  %v118_v24 = vld [vmem:[#allocation7 + $0x78] sm:$0xff] }
  0x72   :  { %v921_v22 = vpack.c.bf16 %v116_v21, %v115_v20  ;;  %v924_v25 = vpack.c.bf16 %v118_v24, %v117_v23  ;;  %v189_v26 = vld [vmem:[#allocation8] sm:$0xff]  ;;  %v190_v27 = vld [vmem:[#allocation8 + $0x8] sm:$0xff]  ;;  %v102_v28 = vld [vmem:[#allocation2] sm:$0xff]  ;;  %v1203_v21 = vmov 2102212464   ;;  %p1167_p9 = por %p1166_p8, %p1165_p7 }
  0x73   :  { %v927_v29 = vpack.c.bf16 %v190_v27, %v189_v26  ;;  %v191_v30 = vld [vmem:[#allocation8 + $0x10] sm:$0xff]  ;;  %v192_v31 = vld [vmem:[#allocation8 + $0x18] sm:$0xff]  ;;  %v193_v33 = vld [vmem:[#allocation8 + $0x20] sm:$0xff]  ;;  %v1204_v23 = vmov 920167782  }
  0x74   :  { %907 = vmatpush3.bf16.msra.mxu1 %v906_v7  ;;  %v930_v32 = vpack.c.bf16 %v192_v31, %v191_v30  ;;  %v194_v34 = vld [vmem:[#allocation8 + $0x28] sm:$0xff]  ;;  %v195_v36 = vld [vmem:[#allocation8 + $0x30] sm:$0xff]  ;;  %v196_v37 = vld [vmem:[#allocation8 + $0x38] sm:$0xff]  ;;  %v1206_v30 = vmov 683565275   ;;  %p1168_p10 = pnand %p1167_p9, %p1161_p6 }
  0x75   :  { %908 = vmatprep.subr.bf16.mxu1 %v1200_v0  ;;  %v933_v35 = vpack.c.bf16 %v194_v34, %v193_v33  ;;  %v936_v38 = vpack.c.bf16 %v196_v37, %v195_v36  ;;  %v197_v39 = vld [vmem:[#allocation8 + $0x40] sm:$0xff]  ;;  %v198_v40 = vld [vmem:[#allocation8 + $0x48] sm:$0xff]  ;;  %v199_v42 = vld [vmem:[#allocation8 + $0x50] sm:$0xff] }
  0x76   :  { %v939_v41 = vpack.c.bf16 %v198_v40, %v197_v39  ;;  %v200_v43 = vld [vmem:[#allocation8 + $0x58] sm:$0xff]  ;;  %v201_v45 = vld [vmem:[#allocation8 + $0x60] sm:$0xff]  ;;  %v202_v46 = vld [vmem:[#allocation8 + $0x68] sm:$0xff] }
  0x77   :  { %v942_v44 = vpack.c.bf16 %v200_v43, %v199_v42  ;;  %v945_v47 = vpack.c.bf16 %v202_v46, %v201_v45  ;;  %v203_v48 = vld [vmem:[#allocation8 + $0x70] sm:$0xff]  ;;  %v204_v49 = vld [vmem:[#allocation8 + $0x78] sm:$0xff]  ;;  %v511_v51 = vld [vmem:[#allocation11] sm:$0xff] }
  0x78   :  { %910 = vmatpush3.bf16.msra.mxu1 %v909_v10  ;;  %v948_v50 = vpack.c.bf16 %v204_v49, %v203_v48  ;;  %v512_v52 = vld [vmem:[#allocation11 + $0x8] sm:$0xff]  ;;  %v513_v53 = vld [vmem:[#allocation11 + $0x10] sm:$0xff]  ;;  %v514_v55 = vld [vmem:[#allocation11 + $0x18] sm:$0xff] }
  0x79   :  { %911 = vmatprep.subr.bf16.mxu1 %v1200_v0  ;;  %v951_v54 = vpack.c.bf16 %v512_v52, %v511_v51  ;;  %v954_v56 = vpack.c.bf16 %v514_v55, %v513_v53  ;;  %v515_v57 = vld [vmem:[#allocation11 + $0x20] sm:$0xff]  ;;  %v516_v58 = vld [vmem:[#allocation11 + $0x28] sm:$0xff]  ;;  %v1354_v60 = vld [vmem:[#allocation5] sm:$0xff] }
  0x7a   :  { %v957_v59 = vpack.c.bf16 %v516_v58, %v515_v57  ;;  %v289_v61 = vand.u32 2139095040, %v1354_v60  ;;  %v517_v3 = vld [vmem:[#allocation11 + $0x30] sm:$0xff]  ;;  %v518_v4 = vld [vmem:[#allocation11 + $0x38] sm:$0xff]  ;;  %v519_v7 = vld [vmem:[#allocation11 + $0x40] sm:$0xff]  ;;  %v286_v20 = vand.u32 2147483647, %v1354_v60  ;;  %vm378_vm13 = vweird.f32 %v1354_v60 }
  0x7b   :  { %952 = vmatpush3.bf16.msra.mxu0 %v951_v54  ;;  %v960_v5 = vpack.c.bf16 %v518_v4, %v517_v3  ;;  %v520_v8 = vld [vmem:[#allocation11 + $0x48] sm:$0xff]  ;;  %v521_v10 = vld [vmem:[#allocation11 + $0x50] sm:$0xff]  ;;  %v522_v11 = vld [vmem:[#allocation11 + $0x58] sm:$0xff]  ;;  %vm288_vm8 = vcmp.lt.s32.totalorder %v1354_v60, 0 }
  0x7c   :  { %913 = vmatpush3.bf16.msra.mxu1 %v912_v13  ;;  %953 = vmatprep.subr.bf16.mxu0 %v1200_v0  ;;  %v290_v62 = vshrl.u32 %v289_v61, 23  ;;  %v963_v9 = vpack.c.bf16 %v520_v8, %v519_v7  ;;  %v966_v13 = vpack.c.bf16 %v522_v11, %v521_v10  ;;  %v523_v14 = vld [vmem:[#allocation11 + $0x60] sm:$0xff]  ;;  %v524_v15 = vld [vmem:[#allocation11 + $0x68] sm:$0xff]  ;;  %v525_v18 = vld [vmem:[#allocation11 + $0x70] sm:$0xff]  ;;  %v293_v40 = vand.u32 8388607, %v286_v20 }
  0x7d   :  { %914 = vmatprep.subr.bf16.mxu1 %v1200_v0  ;;  %v969_v17 = vpack.c.bf16 %v524_v15, %v523_v14  ;;  %vm287_vm9 = vcmp.le.f32.partialorder %v286_v20, 0.7853982 }
  0x7e   :  { %v686_v63 = vadd.s32 4294967169, %v290_v62  ;;  %v294_v46 = vor.u32 8388608, %v293_v40 }
  0x7f   :  { %955 = vmatpush3.bf16.msra.mxu0 %v954_v56 }
  0x80   :  { %916 = vmatpush3.bf16.msra.mxu1 %v915_v16  ;;  %956 = vmatprep.subr.bf16.mxu0 %v1200_v0  ;;  %v296_v2 = vadd.s32 1, %v686_v63  ;;  %v334_v52 = vshll.u32 %v294_v46, 8 }
  0x81   :  { %917 = vmatprep.subr.bf16.mxu1 %v1200_v0 }
  0x82   :  { %vm297_vm1 = vcmp.gt.s32.totalorder %v296_v2, 0 }
  0x83   :  { %958 = vmatpush3.bf16.msra.mxu0 %v957_v59  ;;  %v298_v6 = vsel %vm297_vm1, %v296_v2, 0 }
  0x84   :  { %919 = vmatpush3.bf16.msra.mxu1 %v918_v19  ;;  %959 = vmatprep.subr.bf16.mxu0 %v1200_v0  ;;  %v300_v12 = vand.u32 31, %v298_v6  ;;  %v526_v19 = vld [vmem:[#allocation11 + $0x78] sm:$0xff]  ;;  %v299_v26 = vshrl.u32 %v298_v6, 5 }
  0x85   :  { %920 = vmatprep.subr.bf16.mxu1 %v1200_v0 }
  0x86   :  { %v301_v16 = vsub.s32 32, %v300_v12  ;;  %v315_v27 = vshll.u32 %v1204_v23, %v300_v12  ;;  %v303_v31 = vshll.u32 %v1206_v30, %v300_v12  ;;  %vm321_vm2 = vcmp.lt.s32.totalorder %v299_v26, 4 }
  0x87   :  { %961 = vmatpush3.bf16.msra.mxu0 %v960_v5  ;;  %vm318_vm3 = vcmp.lt.s32.totalorder %v299_v26, 1  ;;  %vm320_vm4 = vcmp.lt.s32.totalorder %v299_v26, 3  ;;  %vm319_vm5 = vcmp.lt.s32.totalorder %v299_v26, 2 }
  0x88   :  { %922 = vmatpush3.bf16.msra.mxu1 %v921_v22  ;;  %962 = vmatprep.subr.bf16.mxu0 %v1200_v0  ;;  %v312_v22 = vshll.u32 %v1203_v21, %v300_v12  ;;  %v313_v24 = vshrl.u32 %v1204_v23, %v301_v16  ;;  %v302_v57 = vshrl.u32 %v1206_v30, %v301_v16 }
  0x89   :  { %923 = vmatprep.subr.bf16.mxu1 %v1200_v0 }
  0x8a   :  { %v314_v39 = vor.u32 %v313_v24, %v312_v22 }
  0x8b   :  { %964 = vmatpush3.bf16.msra.mxu0 %v963_v9 }
  0x8c   :  { %925 = vmatpush3.bf16.msra.mxu1 %v924_v25  ;;  %965 = vmatprep.subr.bf16.mxu0 %v1200_v0  ;;  %v972_v25 = vpack.c.bf16 %v526_v19, %v525_v18  ;;  %v327_v45 = vsel %vm321_vm2, %v314_v39, 920167782 }
  0x8d   :  { %926 = vmatprep.subr.bf16.mxu1 %v1200_v0 }
  0x8f   :  { %795 = vmatmul.mubr.f32.vlgmr.msra.gmra.mrb[0].mxu1 %v102_v28  ;;  %967 = vmatpush3.bf16.msra.mxu0 %v966_v13 }
  0x90   :  { %928 = vmatpush3.bf16.msra.mxu1 %v927_v29  ;;  %829 = vmatprep.mubr.msk.f32.mxu1 %vm1201_vm0, %v1202_v1 }
  0x91   :  { %929 = vmatprep.subr.bf16.mxu1 %v1200_v0  ;;  %968 = vmatprep.subr.bf16.mxu0 %v1200_v0 }
  0x93   :  { %970 = vmatpush3.bf16.msra.mxu0 %v969_v17 }
  0x94   :  { %931 = vmatpush3.bf16.msra.mxu1 %v930_v32  ;;  %971 = vmatprep.subr.bf16.mxu0 %v1200_v0  ;;  %v1207_v32 = vmov 2475754826  }
  0x95   :  { %932 = vmatprep.subr.bf16.mxu1 %v1200_v0  ;;  %v304_v33 = vshrl.u32 %v1207_v32, %v301_v16  ;;  %v306_v34 = vshll.u32 %v1207_v32, %v300_v12 }
  0x97   :  { %973 = vmatpush3.bf16.msra.mxu0 %v972_v25  ;;  %v305_v42 = vor.u32 %v304_v33, %v303_v31 }
  0x98   :  { %934 = vmatpush3.bf16.msra.mxu1 %v933_v35  ;;  %v1208_v35 = vmov 2131351028   ;;  %974 = vmatprep.subr.bf16.mxu0 %v1200_v0 }
  0x99   :  { %935 = vmatprep.subr.bf16.mxu1 %v1200_v0  ;;  %v307_v36 = vshrl.u32 %v1208_v35, %v301_v16  ;;  %v309_v37 = vshll.u32 %v1208_v35, %v300_v12  ;;  %v322_v62 = vsel %vm318_vm3, %v302_v57, %v305_v42 }
  0x9b   :  { %v308_v43 = vor.u32 %v307_v36, %v306_v34 }
  0x9c   :  { %937 = vmatpush3.bf16.msra.mxu1 %v936_v38  ;;  %v310_v38 = vshrl.u32 %v1203_v21, %v301_v16 }
  0x9d   :  { %938 = vmatprep.subr.bf16.mxu1 %v1200_v0  ;;  %v326_v48 = vsel %vm318_vm3, %v305_v42, %v308_v43 }
  0xa0   :  { %940 = vmatpush3.bf16.msra.mxu1 %v939_v41 }
  0xa1   :  { %941 = vmatprep.subr.bf16.mxu1 %v1200_v0 }
  0xa4   :  { %943 = vmatpush3.bf16.msra.mxu1 %v942_v44  ;;  %v311_v44 = vor.u32 %v310_v38, %v309_v37 }
  0xa5   :  { %944 = vmatprep.subr.bf16.mxu1 %v1200_v0 }
  0xa6   :  { %v328_v49 = vsel %vm320_vm4, %v311_v44, %v327_v45  ;;  %v323_v61 = vsel %vm321_vm2, %v311_v44, 2102212464 }
  0xa7   :  { %v329_v53 = vsel %vm319_vm5, %v326_v48, %v328_v49  ;;  %v324_v63 = vsel %vm320_vm4, %v308_v43, %v323_v61  ;;  %v497_v61 = vld [vmem:[#allocation10 + $0x10] sm:$0xff] }
  0xa8   :  { %946 = vmatpush3.bf16.msra.mxu1 %v945_v47  ;;  %v1374_v55 = vmul.u32.u64.low %v334_v52, %v329_v53  ;;  %v1375_v56 = vmul.u32.u64.high %v334_v52, %v329_v53, %v1374_v55  ;;  %v325_v2 = vsel %vm319_vm5, %v322_v62, %v324_v63  ;;  %v496_v53 = vld [vmem:[#allocation10 + $0x8] sm:$0xff]  ;;  %v498_v62 = vld [vmem:[#allocation10 + $0x18] sm:$0xff] }
  0xa9   :  { %947 = vmatprep.subr.bf16.mxu1 %v1200_v0  ;;  %v341_v4 = vmul.u32 %v334_v52, %v325_v2  ;;  %v978_v63 = vpack.c.bf16 %v498_v62, %v497_v61  ;;  %v499_v2 = vld [vmem:[#allocation10 + $0x20] sm:$0xff] }
  0xaa   :  { %v344_v3 = vadd.s32 1, %v1375_v56 }
  0xac   :  { %949 = vmatpush3.bf16.msra.mxu1 %v948_v50  ;;  %v330_v50 = vsel %vm318_vm3, %v308_v43, %v311_v44 }
  0xaf   :  { %830 = vmatmul.mubr.f32.vlgmr.msra.gmra.mrb[2].mxu1 %v102_v28  ;;  %v1205_v28 = vmov 1326507024  }
  0xb0   :  { %v316_v29 = vshrl.u32 %v1205_v28, %v301_v16 }
  0xb2   :  { %v317_v41 = vor.u32 %v316_v29, %v315_v27 }
  0xb4   :  { %v331_v47 = vsel %vm321_vm2, %v317_v41, 1326507024 }
  0xb5   :  { %v332_v51 = vsel %vm320_vm4, %v314_v39, %v331_v47 }
  0xb6   :  { %v333_v54 = vsel %vm319_vm5, %v330_v50, %v332_v51 }
  0xb7   :  { %v1377_v58 = vmul.u32.u64.low %v334_v52, %v333_v54  ;;  %v1378_v59 = vmul.u32.u64.high %v334_v52, %v333_v54, %v1377_v58  ;;  %v495_v52 = vld [vmem:[#allocation10] sm:$0xff] }
  0xb8   :  { %v975_v58 = vpack.c.bf16 %v496_v53, %v495_v52 }
  0xb9   :  { %vm343_vm6 = vc.u32 %v1378_v59, %v1374_v55  ;;  %v342_v17 = vadd.s32 %v1374_v55, %v1378_v59 }
  0xba   :  { %v345_v5 = vsel %vm343_vm6, %v344_v3, %v1375_v56  ;;  %v500_v3 = vld [vmem:[#allocation10 + $0x28] sm:$0xff] }
  0xbb   :  { %v346_v6 = vadd.s32 %v345_v5, %v341_v4  ;;  %v981_v4 = vpack.c.bf16 %v500_v3, %v499_v2  ;;  %v501_v5 = vld [vmem:[#allocation10 + $0x30] sm:$0xff] }
  0xbd   :  { %v347_v7 = vadd.s32 536870912, %v346_v6 }
  0xbf   :  { %v348_v8 = vshrl.u32 %v347_v7, 30 }
  0xc1   :  { %v349_v9 = vshll.u32 %v348_v8, 30  ;;  %v372_v33 = vsub.s32 4, %v348_v8 }
  0xc3   :  { %v350_v10 = vsub.s32 %v346_v6, %v349_v9  ;;  %v373_v35 = vsel %vm288_vm8, %v372_v33, %v348_v8  ;;  %v502_v6 = vld [vmem:[#allocation10 + $0x38] sm:$0xff]  ;;  %v503_v8 = vld [vmem:[#allocation10 + $0x40] sm:$0xff]  ;;  %v504_v9 = vld [vmem:[#allocation10 + $0x48] sm:$0xff] }
  0xc4   :  { %v375_v36 = vsel %vm287_vm9, 0, %v373_v35  ;;  %v984_v7 = vpack.c.bf16 %v502_v6, %v501_v5 }
  0xc5   :  { %v352_v11 = vsub.s32 0, %v350_v10  ;;  %v483_v38 = vadd.s32 3, %v375_v36 }
  0xc7   :  { %v687_v12 = vmin.u32 %v352_v11, %v350_v10  ;;  %v484_v45 = vand.u32 3, %v483_v38  ;;  %v379_v11 = vand.u32 3, %v375_v36 }
  0xc9   :  { %v354_v13 = vclz %v687_v12  ;;  %vm486_vm10 = vcmp.eq.s32.totalorder %v484_v45, 0  ;;  %vm489_vm11 = vcmp.eq.s32.totalorder %v484_v45, 2  ;;  %vm485_vm12 = vcmp.lt.s32.totalorder %v484_v45, 2  ;;  %v506_v12 = vld [vmem:[#allocation10 + $0x58] sm:$0xff] }
  0xca   :  { %vm384_vm1 = vcmp.eq.s32.totalorder %v379_v11, 2  ;;  %vm380_vm2 = vcmp.lt.s32.totalorder %v379_v11, 2 }
  0xcb   :  { %v688_v14 = vadd.s32 4294967294, %v354_v13 }
  0xcd   :  { %vm689_vm7 = vcmp.lt.s32.totalorder %v688_v14, 0 }
  0xce   :  { %v357_v15 = vsel %vm689_vm7, 0, %v688_v14  ;;  %v507_v14 = vld [vmem:[#allocation10 + $0x60] sm:$0xff] }
  0xcf   :  { %v362_v16 = vsub.s32 4294967266, %v357_v15  ;;  %v358_v18 = vsub.s32 32, %v357_v15  ;;  %v359_v21 = vshll.u32 %v350_v10, %v357_v15  ;;  %v987_v10 = vpack.c.bf16 %v504_v9, %v503_v8  ;;  %v508_v15 = vld [vmem:[#allocation10 + $0x68] sm:$0xff] }
  0xd1   :  { %v363_v19 = vadd.s32 127, %v362_v16  ;;  %v360_v22 = vshrl.u32 %v342_v17, %v358_v18  ;;  %v993_v18 = vpack.c.bf16 %v508_v15, %v507_v14 }
  0xd3   :  { %v364_v23 = vshll.u32 %v363_v19, 23  ;;  %v361_v26 = vor.u32 %v360_v22, %v359_v21  ;;  %v509_v19 = vld [vmem:[#allocation10 + $0x70] sm:$0xff]  ;;  %v510_v21 = vld [vmem:[#allocation10 + $0x78] sm:$0xff] }
  0xd5   :  { %v365_v27 = vor.u32 4788187, %v364_v23  ;;  %v368_v29 = vcvt.s32.f32 %v361_v26  ;;  %v996_v23 = vpack.c.bf16 %v510_v21, %v509_v19 }
  0xd7   :  { %v366_v28 = vand.u32 2147483647, %v365_v27 }
  0xd9   :  { %v369_v30 = vmul.f32 %v368_v29, %v366_v28 }
  0xdb   :  { %v370_v31 = vxor.u32 2147483648, %v369_v30 }
  0xdd   :  { %v371_v32 = vsel %vm288_vm8, %v370_v31, %v369_v30 }
  0xde   :  { %v374_v34 = vsel %vm287_vm9, %v1354_v60, %v371_v32 }
  0xdf   :  { %1022 = vcosq.f32 %v374_v34 }
  0xe0   :  { %1024 = vsinq.f32 %v374_v34 }
  0xe9   :  { %v1023_v42 = vpop.eup %1022 }
  0xea   :  { %v1025_v44 = vpop.eup %1024  ;;  %v385_v20 = vxor.u32 2147483648, %v1023_v42 }
  0xeb   :  { %v382_v46 = vxor.u32 2147483648, %v1025_v44 }
  0xec   :  { %v491_v48 = vsel %vm489_vm11, %v385_v20, %v1025_v44  ;;  %v386_v17 = vsel %vm384_vm1, %v385_v20, %v1025_v44 }
  0xed   :  { %v488_v47 = vsel %vm486_vm10, %v1023_v42, %v382_v46 }
  0xee   :  { %v492_v49 = vsel %vm485_vm12, %v488_v47, %v491_v48 }
  0xef   :  { %v493_v55 = vsel %vm378_vm13, nan, %v492_v49 }
 0x162   :  { %v185_v24 = vpop.f32.mrb[0].mxu1 }
 0x163   :  { %v796_v25 = vpop.f32.mrb[1].mxu1  ;;  %v275_v39 = vmul.f32 %v185_v24, %v185_v24 }
 0x182   :  { %v271_v37 = vpop.f32.mrb[2].mxu1 }
 0x183   :  { %v276_v40 = vmul.f32 %v271_v37, %v271_v37  ;;  %v831_v41 = vpop.f32.mrb[3].mxu1 }
 0x185   :  { %v277_v43 = vadd.f32 %v276_v40, %v275_v39 }
 0x187   :  { %1026 = vrsqrt.f32 %v277_v43  ;;  %vm280_vm14 = vcmp.eq.f32.partialorder %v277_v43, inf  ;;  %v283_v54 = vand.u32 2147483648, %v277_v43  ;;  %vm282_vm15 = vcmp.eq.f32.partialorder %v277_v43, 0.0 }
 0x191   :  { %v1027_v50 = vpop.eup %1026 }
 0x192   :  { %v279_v51 = vmul.f32 %v1027_v50, %v277_v43 }
 0x194   :  { %v281_v56 = vsel %vm280_vm14, %v277_v43, %v279_v51 }
 0x195   :  { %v284_v57 = vsel %vm282_vm15, %v283_v54, %v281_v56 }
 0x196   :  { %v494_v59 = vmul.f32 %v493_v55, %v284_v57 }
 0x198   :  { %865 = vmatmul.mubr.f32.vlgmr.msra.gmra.mrb[0].mxu0 %v494_v59 }
 0x199   :  { %976 = vmatpush3.bf16.msra.mxu0 %v975_v58  ;;  %899 = vmatprep.mubr.msk.f32.mxu0 %vm1201_vm0, %v1202_v1  ;;  %v505_v1 = vld [vmem:[#allocation10 + $0x50] sm:$0xff]  ;;  %vm381_vm0 = vcmp.eq.s32.totalorder %v379_v11, 0 }
 0x19a   :  { %977 = vmatprep.subr.bf16.mxu0 %v1200_v0  ;;  %v990_v13 = vpack.c.bf16 %v506_v12, %v505_v1  ;;  %v383_v16 = vsel %vm381_vm0, %v1023_v42, %v382_v46 }
 0x19b   :  { %v387_v22 = vsel %vm380_vm2, %v383_v16, %v386_v17 }
 0x19c   :  { %v388_v24 = vsel %vm378_vm13, nan, %v387_v22 }
 0x19d   :  { %979 = vmatpush3.bf16.msra.mxu0 %v978_v63  ;;  %v389_v25 = vmul.f32 %v388_v24, %v284_v57 }
 0x19e   :  { %980 = vmatprep.subr.bf16.mxu0 %v1200_v0 }
 0x1a1   :  { %982 = vmatpush3.bf16.msra.mxu0 %v981_v4 }
 0x1a2   :  { %983 = vmatprep.subr.bf16.mxu0 %v1200_v0 }
 0x1a5   :  { %985 = vmatpush3.bf16.msra.mxu0 %v984_v7 }
 0x1a6   :  { %986 = vmatprep.subr.bf16.mxu0 %v1200_v0 }
 0x1a9   :  { %988 = vmatpush3.bf16.msra.mxu0 %v987_v10 }
 0x1aa   :  { %989 = vmatprep.subr.bf16.mxu0 %v1200_v0 }
 0x1ad   :  { %991 = vmatpush3.bf16.msra.mxu0 %v990_v13 }
 0x1ae   :  { %992 = vmatprep.subr.bf16.mxu0 %v1200_v0 }
 0x1b1   :  { %994 = vmatpush3.bf16.msra.mxu0 %v993_v18 }
 0x1b2   :  { %995 = vmatprep.subr.bf16.mxu0 %v1200_v0 }
 0x1b5   :  { %997 = vmatpush3.bf16.msra.mxu0 %v996_v23 }
 0x1b8   :  { %900 = vmatmul.mubr.f32.vlgmr.msra.gmra.mrb[0].mxu0 %v389_v25 }
 0x28b   :  { %v663_v26 = vpop.f32.mrb[0].mxu0 }
 0x28c   :  { %667 = vst [vmem:[#allocation13] sm:$0xff] %v663_v26  ;;  %v901_v27 = vpop.f32.mrb[1].mxu0 }
 0x28d   :  { %1171 = shalt.err (!%p1168_p10)
}
 0x28e   :  { %s1172_s0 = scalar_lea.hbm %s1424_s6, 128 }
 0x28f   :  { %p1173_p11 = scmp.ne.s32.totalorder %s1424_s6, %s1172_s0  ;;  %p1176_p12 = scmp.lt.u32.totalorder %s1172_s0, %s1424_s6 }
 0x291   :  { %p1178_p13 = pnand %p1176_p12, %p1173_p11 }
 0x293   :  { %1181 = shalt.err (!%p1178_p13)
}
 0x294   :  { %677 = dma.vmem_to_hbm [thread:$0]  %s675_s20, 128, %s1424_s6, [#allocation4]  }
 0x295   :  { %1190 = dma.done.wait [#allocation4], 128  }
 0x296   :  { %1191 = vsyncadd [#allocation4], 4294967168 }
 0x297   :  { %681 = vsyncpa [#allocation3], 1 }
 0x298   :  { %682 = vsyncpa [#allocation6], 1 }
 0x299   :  { %683 = vsyncpa [#allocation9], 1 }
 0x29a   :  { %684 = vsyncpa [#allocation12], 1 }
 0x29b   :  { %685 = vsyncpa [#allocation4], 1 }

</bundles_post_ra>
